<compile_context>
chip_gen: v5e
topology: v5e:2x2
jax: 0.10.0
libtpu: 0.0.40
codegen_flags: <defaults>
</compile_context>

<pallas_src>
import jax
import jax.numpy as jnp
from jax.experimental import pallas as pl
from jax.experimental.pallas import tpu as pltpu


# ---------------------------------------------------------------------------
# shared per-point MLP: 1x1 convs == matmuls with the point axis on lanes
# ---------------------------------------------------------------------------
def _mlp_layers(x, w_refs, b_refs, bf16_epilogue, compute_dtype):
    """x: (C_in, L) compute_dtype -> (C_last, L) float32."""
    n = len(w_refs)
    h = x
    for i in range(n):
        acc = jnp.dot(w_refs[i][...], h, preferred_element_type=jnp.float32)
        last = i == n - 1
        if bf16_epilogue and not last:
            # bias + ReLU on the VPU in bf16: halves VPU traffic / vreg pressure
            h = jnp.maximum(acc.astype(compute_dtype)
                            + b_refs[i][...].astype(compute_dtype), 0.0)
        else:
            h = jnp.maximum(acc + b_refs[i][...], 0.0)
            if not last:
                h = h.astype(compute_dtype)
    return h


def _make_fused_kernel(n_layers, bpt, n_pad, bf16_epilogue, compute_dtype):
    """One grid step = `bpt` whole batches on the lane axis; no accumulator."""
    def kernel(*refs):
        x_ref = refs[0]
        w_refs = refs[1:1 + n_layers]
        b_refs = refs[1 + n_layers:1 + 2 * n_layers]
        o_ref = refs[-1]                                      # (C_last, bpt)
        h = _mlp_layers(x_ref[...], w_refs, b_refs, bf16_epilogue,
                        compute_dtype)                        # (C_last, bpt*n_pad)
        for j in range(bpt):                                  # 128-aligned segments
            seg = h[:, j * n_pad:(j + 1) * n_pad]
            o_ref[:, j:j + 1] = jnp.max(seg, axis=-1, keepdims=True)
    return kernel


def _make_tiled_kernel(n_layers, tile_n, bf16_epilogue, compute_dtype):
    """grid=(B, n_tiles): wide (C_last, 128) running max across N tiles."""
    n_fold = tile_n // 128

    def kernel(*refs):
        x_ref = refs[0]
        w_refs = refs[1:1 + n_layers]
        b_refs = refs[1 + n_layers:1 + 2 * n_layers]
        o_ref = refs[-2]                                      # (C_last, 1)
        acc_ref = refs[-1]                                    # (C_last, 128)
        t = pl.program_id(1)

        h = _mlp_layers(x_ref[...], w_refs, b_refs, bf16_epilogue,
                        compute_dtype)                        # (C_last, tile_n)

        # Per tile: pure VALU elementwise maxes on vreg-aligned lane slices
        # (no per-tile XLU reduce, no 1-lane masked scratch RMW).
        folded = h[:, 0:128]
        for s in range(1, n_fold):
            folded = jnp.maximum(folded, h[:, s * 128:(s + 1) * 128])

        @pl.when(t == 0)
        def _():
            acc_ref[...] = folded

        @pl.when(t != 0)
        def _():
            acc_ref[...] = jnp.maximum(acc_ref[...], folded)

        # Single cross-lane reduce + single narrow output store per batch.
        @pl.when(t == pl.num_programs(1) - 1)
        def _():
            o_ref[...] = jnp.max(acc_ref[...], axis=-1, keepdims=True)
    return kernel


# ---------------------------------------------------------------------------
# generation-aware planning helpers
# ---------------------------------------------------------------------------
def _vmem_capacity_bytes():
    try:
        cap = int(pltpu.get_tpu_info().vmem_capacity_bytes)
        if cap > 0:
            return cap
    except Exception:
        pass
    return 64 << 20          # conservative default (v7x per-core VMEM)


def _has_bf16_vpu():
    # v5e has no bf16 VALU -> keep the bias+ReLU epilogue in f32 there.
    try:
        kind = jax.devices()[0].device_kind.lower()
        return not ("v5 lite" in kind or "v5e" in kind or "v5litepod" in kind)
    except Exception:
        return True


def _plan_lanes(cin, channels, bf16_epilogue, vmem_cap, in_bytes):
    """Returns (const_bytes, bytes_per_lane, max lane width fitting VMEM)."""
    const_bytes = 0
    prev = cin
    for c in channels:
        const_bytes += c * prev * in_bytes + c * 4            # weight + f32 bias
        prev = c
    prev, prev_b = cin, in_bytes
    per_lane = 0
    for i, c in enumerate(channels):
        per_lane = max(per_lane, 4 * c + prev_b * prev)       # f32 dot out + input
        prev = c
        prev_b = 2 if (bf16_epilogue and i < len(channels) - 1) else 4
    per_lane += 2 * cin * in_bytes                            # 2nd input buffer
    budget = int(0.78 * vmem_cap) - const_bytes - (2 << 20)
    if budget <= per_lane * 128:
        return const_bytes, per_lane, 128
    return const_bytes, per_lane, (budget // per_lane) // 128 * 128


# ---------------------------------------------------------------------------
# wrapper
# ---------------------------------------------------------------------------
def pointnet_sa_group_all(xyz, points, conv_ws, conv_bs, bn_gammas, bn_betas,
                          bn_means, bn_vars, *, tile_n=None,
                          batches_per_step=None, eps=1e-5,
                          compute_dtype=jnp.bfloat16, bf16_epilogue=None):
    """xyz: [B, 3, N], points: [B, D, N] (torch channels-first layout).

    Returns (new_xyz [B, 3, 1], new_points [B, C_out, 1]) matching the PyTorch
    module with group_all=True and BatchNorm in eval mode.
    """
    B, _, N = xyz.shape
    D = 0 if points is None else points.shape[1]
    cin = 3 + D
    in_bytes = jnp.dtype(compute_dtype).itemsize
    if bf16_epilogue is None:
        bf16_epilogue = (jnp.dtype(compute_dtype) == jnp.dtype(jnp.bfloat16)
                         and _has_bf16_vpu())

    # --- fold conv bias + BN(eval) into the weights:
    #     y = scale*(W x + cb - mu) + beta  ==  (scale*W) x + b'
    fused_ws, fused_bs = [], []
    for W, cb, g, bta, mu, var in zip(conv_ws, conv_bs, bn_gammas, bn_betas,
                                      bn_means, bn_vars):
        scale = g / jnp.sqrt(var + eps)
        fused_ws.append((W * scale[:, None]).astype(compute_dtype))   # (Co, Ci)
        fused_bs.append((bta + scale * (cb - mu))
                        .astype(jnp.float32)[:, None])                # (Co, 1)
    n_layers = len(fused_ws)
    channels = [w.shape[0] for w in fused_ws]
    c_last = channels[-1]

    # --- single wrapper concat (one fused HBM pass) + edge-pad N to a lane
    #     multiple: duplicated points never change a max, so padded lanes are
    #     harmless and every per-batch lane segment stays 128-aligned.
    x = xyz if points is None else jnp.concatenate([xyz, points], axis=1)
    n_pad = -(-N // 128) * 128
    if n_pad != N:
        x = jnp.pad(x, ((0, 0), (0, 0), (0, n_pad - N)), mode="edge")
    x = x.astype(compute_dtype)                                # [B, cin, n_pad]

    vmem_cap = _vmem_capacity_bytes()
    const_bytes, per_lane, max_lanes = _plan_lanes(
        cin, channels, bf16_epilogue, vmem_cap, in_bytes)

    # --- schedule selection --------------------------------------------------
    use_fused_batch = tile_n is None and (batches_per_step is not None
                                          or max_lanes >= n_pad)
    if use_fused_batch:
        if batches_per_step is not None:
            bpt = max(1, min(int(batches_per_step), B))
        else:
            # keep >= 2 grid steps when B >= 2 so v7x can split across its 2 TCs
            bpt = max(1, min(max_lanes // n_pad, -(-B // 2)))
        n_groups = -(-B // bpt)
        b_pad = n_groups * bpt
        if b_pad != B:
            x = jnp.pad(x, ((0, b_pad - B), (0, 0), (0, 0)), mode="edge")
        lanes_per_step = bpt * n_pad
        tiles_per_batch = 1
    else:
        if tile_n is None:
            cands = [t for t in range(128, n_pad + 1, 128)
                     if n_pad % t == 0 and t <= max_lanes]
            tile_n = max(cands) if cands else 128
        tile_n = int(min(tile_n, n_pad))
        assert tile_n % 128 == 0 and n_pad % tile_n == 0, (
            "tile_n must be a multiple of 128 that divides the padded N")
        tiles_per_batch = n_pad // tile_n
        b_pad = B
        lanes_per_step = tile_n

    # lane-fused channels-first layout: [cin, b_pad * n_pad]
    x2d = jnp.transpose(x, (1, 0, 2)).reshape(cin, b_pad * n_pad)

    # --- VMEM + cost bookkeeping ----------------------------------------------
    vmem_est = (const_bytes + per_lane * lanes_per_step
                + 2 * c_last * 128 * 4 + (2 << 20))
    vmem_limit = int(min(max(int(vmem_est * 1.5), 32 << 20),
                         int(0.85 * vmem_cap)))
    flops = 2 * b_pad * n_pad * sum(w.shape[0] * w.shape[1] for w in fused_ws)
    bytes_accessed = (int(x2d.size) * in_bytes
                      + sum(int(w.size) * in_bytes for w in fused_ws)
                      + sum(int(b.size) * 4 for b in fused_bs)
                      + b_pad * c_last * 4)
    cost = pl.CostEstimate(flops=int(flops), transcendentals=0,
                           bytes_accessed=int(bytes_accessed))

    def _build(single_buffer_consts):
        def const_spec(shape, cmap):
            if single_buffer_consts:
                # constants never change block index -> no double buffering
                return pl.BlockSpec(shape, cmap, pipeline_mode=pl.Buffered(1))
            return pl.BlockSpec(shape, cmap)

        if use_fused_batch:
            cmap = lambda i: (0, 0)
            in_specs = ([pl.BlockSpec((cin, bpt * n_pad), lambda i: (0, i))]
                        + [const_spec(w.shape, cmap) for w in fused_ws]
                        + [const_spec(b.shape, cmap) for b in fused_bs])
            out_specs = pl.BlockSpec((pl.Squeezed(), c_last, bpt),
                                     lambda i: (i, 0, 0))
            out_shape = jax.ShapeDtypeStruct((n_groups, c_last, bpt),
                                             jnp.float32)
            grid = (n_groups,)
            scratch = ()
            dims = ("parallel",)
            kernel = _make_fused_kernel(n_layers, bpt, n_pad, bf16_epilogue,
                                        compute_dtype)
        else:
            cmap = lambda b, t: (0, 0)
            in_specs = ([pl.BlockSpec(
                            (cin, tile_n),
                            lambda b, t: (0, b * tiles_per_batch + t))]
                        + [const_spec(w.shape, cmap) for w in fused_ws]
                        + [const_spec(b.shape, cmap) for b in fused_bs])
            out_specs = pl.BlockSpec((pl.Squeezed(), c_last, 1),
                                     lambda b, t: (b, 0, 0))
            out_shape = jax.ShapeDtypeStruct((B, c_last, 1), jnp.float32)
            grid = (B, tiles_per_batch)
            scratch = (pltpu.VMEM((c_last, 128), jnp.float32),)
            dims = ("parallel", "arbitrary")
            kernel = _make_tiled_kernel(n_layers, tile_n, bf16_epilogue,
                                        compute_dtype)

        return pl.pallas_call(
            kernel,
            out_shape=out_shape,
            grid_spec=pltpu.PrefetchScalarGridSpec(
                num_scalar_prefetch=0,
                grid=grid,
                in_specs=in_specs,
                out_specs=out_specs,
                scratch_shapes=scratch),
            compiler_params=pltpu.CompilerParams(
                dimension_semantics=dims,
                vmem_limit_bytes=vmem_limit),
            cost_estimate=cost,
        )

    args = (x2d, *fused_ws, *fused_bs)
    try:
        feats = jax.block_until_ready(_build(True)(*args))
    except Exception:
        # pipeline_mode=pl.Buffered(1) not supported by this jax version:
        # fall back to default double-buffered constant operands.
        feats = _build(False)(*args)

    if use_fused_batch:
        new_points = (jnp.transpose(feats, (0, 2, 1))
                      .reshape(b_pad, c_last)[:B][:, :, None])   # [B, C_out, 1]
    else:
        new_points = feats                                       # [B, C_out, 1]
    new_xyz = jnp.zeros((B, 3, 1), xyz.dtype)
    return new_xyz, new_points


# ---------------------------------------------------------------------------
# pure-JAX reference
# ---------------------------------------------------------------------------
def _reference(xyz, points, conv_ws, conv_bs, bn_gammas, bn_betas, bn_means,
               bn_vars, eps=1e-5, compute_dtype=None, bf16_epilogue=False):
    """compute_dtype=None -> pure f32 module math; otherwise mirrors the
    kernel's rounding points (bf16 operands, optional bf16 epilogue)."""
    x = xyz if points is None else jnp.concatenate([xyz, points], axis=1)
    h = x.astype(jnp.float32)
    n = len(conv_ws)
    for i, (W, cb, g, bta, mu, var) in enumerate(
            zip(conv_ws, conv_bs, bn_gammas, bn_betas, bn_means, bn_vars)):
        scale = g / jnp.sqrt(var + eps)
        Wf = W * scale[:, None]
        bf = (bta + scale * (cb - mu)).astype(jnp.float32)
        if compute_dtype is not None:
            Wf = Wf.astype(compute_dtype).astype(jnp.float32)
            h = h.astype(compute_dtype).astype(jnp.float32)
        acc = jnp.einsum("oc,bcn->bon", Wf, h, precision="highest")
        if compute_dtype is not None and bf16_epilogue and i < n - 1:
            h = jnp.maximum(acc.astype(compute_dtype)
                            + bf.astype(compute_dtype)[None, :, None],
                            0.0).astype(jnp.float32)
        else:
            h = jnp.maximum(acc + bf[None, :, None], 0.0)
    return jnp.max(h, axis=-1, keepdims=True)                   # [B, C_out, 1]


if __name__ == "__main__":
    key = jax.random.PRNGKey(0)

    # Module config: npoint/radius/nsample are unused when group_all=True.
    B, N, D = 2, 200, 13          # N deliberately not a multiple of 128
    in_channel = 3 + D            # = 16
    mlp = [32, 64]

    k_xyz, k_pts, k_params = jax.random.split(key, 3)
    xyz = jax.random.normal(k_xyz, (B, 3, N), jnp.float32)
    points = jax.random.normal(k_pts, (B, D, N), jnp.float32)

    # Deterministic synthetic parameters (nn.Conv2d(1x1) / BatchNorm2d shapes).
    conv_ws, conv_bs = [], []
    bn_gammas, bn_betas, bn_means, bn_vars = [], [], [], []
    last = in_channel
    for i, co in enumerate(mlp):
        kk = jax.random.fold_in(k_params, i)
        kw, kb, kg, kbe, km, kv = jax.random.split(kk, 6)
        conv_ws.append(0.1 * jax.random.normal(kw, (co, last), jnp.float32))
        conv_bs.append(0.1 * jax.random.normal(kb, (co,), jnp.float32))
        bn_gammas.append(1.0 + 0.1 * jax.random.normal(kg, (co,), jnp.float32))
        bn_betas.append(0.1 * jax.random.normal(kbe, (co,), jnp.float32))
        bn_means.append(0.1 * jax.random.normal(km, (co,), jnp.float32))
        bn_vars.append(jnp.abs(jax.random.normal(kv, (co,), jnp.float32)) + 0.5)
        last = co
    params = (conv_ws, conv_bs, bn_gammas, bn_betas, bn_means, bn_vars)

    bf16_epi = _has_bf16_vpu()

    # Default schedule: batch-fused lane layout, one batch per grid step.
    new_xyz, out_a = pointnet_sa_group_all(xyz, points, *params,
                                           bf16_epilogue=bf16_epi)
    jax.block_until_ready(out_a)

    # Batch-fused schedule with both batches on the lane axis in one step.
    _, out_a2 = pointnet_sa_group_all(xyz, points, *params,
                                      bf16_epilogue=bf16_epi,
                                      batches_per_step=2)
    jax.block_until_ready(out_a2)

    # N-tiled fallback schedule (exercises the wide running-max accumulator).
    _, out_b = pointnet_sa_group_all(xyz, points, *params,
                                     bf16_epilogue=bf16_epi, tile_n=128)
    jax.block_until_ready(out_b)

    ref_mirror = _reference(xyz, points, *params, compute_dtype=jnp.bfloat16,
                            bf16_epilogue=bf16_epi)
    ref_f32 = _reference(xyz, points, *params)

    assert new_xyz.shape == (B, 3, 1)
    for out in (out_a, out_a2, out_b):
        assert out.shape == (B, mlp[-1], 1)
        assert jnp.allclose(out, ref_mirror, rtol=2e-2, atol=2e-2), \
            float(jnp.max(jnp.abs(out - ref_mirror)))
        assert jnp.allclose(out, ref_f32, rtol=6e-2, atol=6e-2), \
            float(jnp.max(jnp.abs(out - ref_f32)))
    # all schedules share the same rounding points -> should agree tightly
    assert jnp.allclose(out_a, out_a2, rtol=1e-5, atol=1e-5)
    assert jnp.allclose(out_a, out_b, rtol=1e-5, atol=1e-5)

    print("KERNEL_OK")
</pallas_src>

<mosaic_0001>
module attributes {stable_mosaic.version = 11 : i64} {
  func.func @kernel(%arg0: i32, %arg1: memref<16x256xbf16, #tpu.memory_space<vmem>>, %arg2: memref<32x16xbf16, #tpu.memory_space<vmem>>, %arg3: memref<64x32xbf16, #tpu.memory_space<vmem>>, %arg4: memref<32x1xf32, #tpu.memory_space<vmem>>, %arg5: memref<64x1xf32, #tpu.memory_space<vmem>>, %arg6: memref<1x64x1xf32, #tpu.memory_space<vmem>>) attributes {dimension_semantics = [#tpu.dimension_semantics<parallel>], iteration_bounds = array<i64: 2>, scalar_prefetch = 0 : i64, scratch_operands = 0 : i64, tpu.core_type = #tpu.core_type<tc>, window_params = [{transform_indices = @transform_0, window_bounds = array<i64: 16, 256>}, {pipeline_mode = #tpu.pipeline_mode<synchronous>, transform_indices = @transform_1, window_bounds = array<i64: 32, 16>}, {pipeline_mode = #tpu.pipeline_mode<synchronous>, transform_indices = @transform_2, window_bounds = array<i64: 64, 32>}, {pipeline_mode = #tpu.pipeline_mode<synchronous>, transform_indices = @transform_3, window_bounds = array<i64: 32, 1>}, {pipeline_mode = #tpu.pipeline_mode<synchronous>, transform_indices = @transform_4, window_bounds = array<i64: 64, 1>}, {transform_indices = @transform_5, window_bounds = array<i64: 1, 64, 1>}]} {
    %c0 = arith.constant 0 : index
    %c0_0 = arith.constant 0 : index
    %0 = vector.load %arg1[%c0, %c0_0] : memref<16x256xbf16, #tpu.memory_space<vmem>>, vector<16x256xbf16>
    %c0_1 = arith.constant 0 : index
    %c0_2 = arith.constant 0 : index
    %1 = vector.load %arg2[%c0_1, %c0_2] : memref<32x16xbf16, #tpu.memory_space<vmem>>, vector<32x16xbf16>
    %cst = arith.constant dense<0.000000e+00> : vector<32x256xf32>
    %2 = tpu.matmul %1, %0, %cst {dimension_numbers = #tpu.dot_dimension_numbers<[1], [0], [0], [1], [0, 0, 1, 1], [], []>} : vector<32x16xbf16>, vector<16x256xbf16>, vector<32x256xf32> -> vector<32x256xf32>
    %3 = arith.truncf %2 : vector<32x256xf32> to vector<32x256xbf16>
    %c0_3 = arith.constant 0 : index
    %c0_4 = arith.constant 0 : index
    %4 = vector.load %arg4[%c0_3, %c0_4] : memref<32x1xf32, #tpu.memory_space<vmem>>, vector<32x1xf32>
    %5 = arith.truncf %4 : vector<32x1xf32> to vector<32x1xbf16>
    %6 = vector.broadcast %5 : vector<32x1xbf16> to vector<32x256xbf16>
    %7 = arith.addf %3, %6 : vector<32x256xbf16>
    %cst_5 = arith.constant 0.000000e+00 : bf16
    %8 = vector.broadcast %cst_5 : bf16 to vector<32x256xbf16>
    %9 = arith.maximumf %7, %8 : vector<32x256xbf16>
    %c0_6 = arith.constant 0 : index
    %c0_7 = arith.constant 0 : index
    %10 = vector.load %arg3[%c0_6, %c0_7] : memref<64x32xbf16, #tpu.memory_space<vmem>>, vector<64x32xbf16>
    %cst_8 = arith.constant dense<0.000000e+00> : vector<64x256xf32>
    %11 = tpu.matmul %10, %9, %cst_8 {dimension_numbers = #tpu.dot_dimension_numbers<[1], [0], [0], [1], [0, 0, 1, 1], [], []>} : vector<64x32xbf16>, vector<32x256xbf16>, vector<64x256xf32> -> vector<64x256xf32>
    %c0_9 = arith.constant 0 : index
    %c0_10 = arith.constant 0 : index
    %12 = vector.load %arg5[%c0_9, %c0_10] : memref<64x1xf32, #tpu.memory_space<vmem>>, vector<64x1xf32>
    %13 = vector.broadcast %12 : vector<64x1xf32> to vector<64x256xf32>
    %14 = arith.addf %11, %13 : vector<64x256xf32>
    %cst_11 = arith.constant 0.000000e+00 : f32
    %15 = vector.broadcast %cst_11 : f32 to vector<64x256xf32>
    %16 = arith.maximumf %14, %15 : vector<64x256xf32>
    %cst_12 = arith.constant dense<0xFF800000> : vector<64xf32>
    %17 = vector.multi_reduction <maximumf>, %16, %cst_12 [1] : vector<64x256xf32> to vector<64xf32>
    %18 = vector.shape_cast %17 : vector<64xf32> to vector<64x1xf32>
    %c0_13 = arith.constant 0 : index
    %c0_14 = arith.constant 0 : index
    %c0_15 = arith.constant 0 : index
    %19 = vector.load %arg6[%c0_13, %c0_14, %c0_15] : memref<1x64x1xf32, #tpu.memory_space<vmem>>, vector<1x64x1xf32>
    %20 = vector.shape_cast %19 : vector<1x64x1xf32> to vector<64x1xf32>
    %21 = vector.shape_cast %18 : vector<64x1xf32> to vector<1x64x1xf32>
    tpu.vector_store %arg6[%c0_13, %c0_14, %c0_15], %21 {strides = array<i32>} : memref<1x64x1xf32, #tpu.memory_space<vmem>>, vector<1x64x1xf32>,
    return
  }
  func.func @transform_0(%arg0: i32) -> (i32, i32) {
    %c0_i32 = arith.constant 0 : i32
    %c0_i32_0 = arith.constant 0 : i32
    return %c0_i32, %arg0 : i32, i32
  }
  func.func @transform_1(%arg0: i32) -> (i32, i32) {
    %c0_i32 = arith.constant 0 : i32
    %c0_i32_0 = arith.constant 0 : i32
    %c0_i32_1 = arith.constant 0 : i32
    return %c0_i32, %c0_i32_0 : i32, i32
  }
  func.func @transform_2(%arg0: i32) -> (i32, i32) {
    %c0_i32 = arith.constant 0 : i32
    %c0_i32_0 = arith.constant 0 : i32
    %c0_i32_1 = arith.constant 0 : i32
    return %c0_i32, %c0_i32_0 : i32, i32
  }
  func.func @transform_3(%arg0: i32) -> (i32, i32) {
    %c0_i32 = arith.constant 0 : i32
    %c0_i32_0 = arith.constant 0 : i32
    %c0_i32_1 = arith.constant 0 : i32
    return %c0_i32, %c0_i32_0 : i32, i32
  }
  func.func @transform_4(%arg0: i32) -> (i32, i32) {
    %c0_i32 = arith.constant 0 : i32
    %c0_i32_0 = arith.constant 0 : i32
    %c0_i32_1 = arith.constant 0 : i32
    return %c0_i32, %c0_i32_0 : i32, i32
  }
  func.func @transform_5(%arg0: i32) -> (i32, i32, i32) {
    %c0_i32 = arith.constant 0 : i32
    %c0_i32_0 = arith.constant 0 : i32
    %c0_i32_1 = arith.constant 0 : i32
    return %arg0, %c0_i32, %c0_i32_0 : i32, i32, i32
  }
}

module attributes {stable_mosaic.version = 11 : i64} {
  func.func @kernel(%arg0: i32, %arg1: memref<16x256xbf16, #tpu.memory_space<vmem>>, %arg2: memref<32x16xbf16, #tpu.memory_space<vmem>>, %arg3: memref<64x32xbf16, #tpu.memory_space<vmem>>, %arg4: memref<32x1xf32, #tpu.memory_space<vmem>>, %arg5: memref<64x1xf32, #tpu.memory_space<vmem>>, %arg6: memref<1x64x1xf32, #tpu.memory_space<vmem>>) attributes {dimension_semantics = [#tpu.dimension_semantics<parallel>], iteration_bounds = array<i64: 2>, scalar_prefetch = 0 : i64, scratch_operands = 0 : i64, tpu.core_type = #tpu.core_type<tc>, window_params = [{transform_indices = @transform_0, window_bounds = array<i64: 16, 256>}, {pipeline_mode = #tpu.pipeline_mode<synchronous>, transform_indices = @transform_1, window_bounds = array<i64: 32, 16>}, {pipeline_mode = #tpu.pipeline_mode<synchronous>, transform_indices = @transform_2, window_bounds = array<i64: 64, 32>}, {pipeline_mode = #tpu.pipeline_mode<synchronous>, transform_indices = @transform_3, window_bounds = array<i64: 32, 1>}, {pipeline_mode = #tpu.pipeline_mode<synchronous>, transform_indices = @transform_4, window_bounds = array<i64: 64, 1>}, {transform_indices = @transform_5, window_bounds = array<i64: 1, 64, 1>}]} {
    %c0 = arith.constant 0 : index
    %c0_0 = arith.constant 0 : index
    %0 = vector.load %arg1[%c0, %c0_0] : memref<16x256xbf16, #tpu.memory_space<vmem>>, vector<16x256xbf16>
    %c0_1 = arith.constant 0 : index
    %c0_2 = arith.constant 0 : index
    %1 = vector.load %arg2[%c0_1, %c0_2] : memref<32x16xbf16, #tpu.memory_space<vmem>>, vector<32x16xbf16>
    %cst = arith.constant dense<0.000000e+00> : vector<32x256xf32>
    %2 = tpu.matmul %1, %0, %cst {dimension_numbers = #tpu.dot_dimension_numbers<[1], [0], [0], [1], [0, 0, 1, 1], [], []>} : vector<32x16xbf16>, vector<16x256xbf16>, vector<32x256xf32> -> vector<32x256xf32>
    %3 = arith.truncf %2 : vector<32x256xf32> to vector<32x256xbf16>
    %c0_3 = arith.constant 0 : index
    %c0_4 = arith.constant 0 : index
    %4 = vector.load %arg4[%c0_3, %c0_4] : memref<32x1xf32, #tpu.memory_space<vmem>>, vector<32x1xf32>
    %5 = arith.truncf %4 : vector<32x1xf32> to vector<32x1xbf16>
    %6 = vector.broadcast %5 : vector<32x1xbf16> to vector<32x256xbf16>
    %7 = arith.addf %3, %6 : vector<32x256xbf16>
    %cst_5 = arith.constant 0.000000e+00 : bf16
    %8 = vector.broadcast %cst_5 : bf16 to vector<32x256xbf16>
    %9 = arith.maximumf %7, %8 : vector<32x256xbf16>
    %c0_6 = arith.constant 0 : index
    %c0_7 = arith.constant 0 : index
    %10 = vector.load %arg3[%c0_6, %c0_7] : memref<64x32xbf16, #tpu.memory_space<vmem>>, vector<64x32xbf16>
    %cst_8 = arith.constant dense<0.000000e+00> : vector<64x256xf32>
    %11 = tpu.matmul %10, %9, %cst_8 {dimension_numbers = #tpu.dot_dimension_numbers<[1], [0], [0], [1], [0, 0, 1, 1], [], []>} : vector<64x32xbf16>, vector<32x256xbf16>, vector<64x256xf32> -> vector<64x256xf32>
    %c0_9 = arith.constant 0 : index
    %c0_10 = arith.constant 0 : index
    %12 = vector.load %arg5[%c0_9, %c0_10] : memref<64x1xf32, #tpu.memory_space<vmem>>, vector<64x1xf32>
    %13 = vector.broadcast %12 : vector<64x1xf32> to vector<64x256xf32>
    %14 = arith.addf %11, %13 : vector<64x256xf32>
    %cst_11 = arith.constant 0.000000e+00 : f32
    %15 = vector.broadcast %cst_11 : f32 to vector<64x256xf32>
    %16 = arith.maximumf %14, %15 : vector<64x256xf32>
    %cst_12 = arith.constant dense<0xFF800000> : vector<64xf32>
    %17 = vector.multi_reduction <maximumf>, %16, %cst_12 [1] : vector<64x256xf32> to vector<64xf32>
    %18 = vector.shape_cast %17 : vector<64xf32> to vector<64x1xf32>
    %c0_13 = arith.constant 0 : index
    %c0_14 = arith.constant 0 : index
    %c0_15 = arith.constant 0 : index
    %19 = vector.load %arg6[%c0_13, %c0_14, %c0_15] : memref<1x64x1xf32, #tpu.memory_space<vmem>>, vector<1x64x1xf32>
    %20 = vector.shape_cast %19 : vector<1x64x1xf32> to vector<64x1xf32>
    %21 = vector.shape_cast %18 : vector<64x1xf32> to vector<1x64x1xf32>
    tpu.vector_store %arg6[%c0_13, %c0_14, %c0_15], %21 {strides = array<i32>} : memref<1x64x1xf32, #tpu.memory_space<vmem>>, vector<1x64x1xf32>,
    return
  }
  func.func @transform_0(%arg0: i32) -> (i32, i32) {
    %c0_i32 = arith.constant 0 : i32
    %c0_i32_0 = arith.constant 0 : i32
    return %c0_i32, %arg0 : i32, i32
  }
  func.func @transform_1(%arg0: i32) -> (i32, i32) {
    %c0_i32 = arith.constant 0 : i32
    %c0_i32_0 = arith.constant 0 : i32
    %c0_i32_1 = arith.constant 0 : i32
    return %c0_i32, %c0_i32_0 : i32, i32
  }
  func.func @transform_2(%arg0: i32) -> (i32, i32) {
    %c0_i32 = arith.constant 0 : i32
    %c0_i32_0 = arith.constant 0 : i32
    %c0_i32_1 = arith.constant 0 : i32
    return %c0_i32, %c0_i32_0 : i32, i32
  }
  func.func @transform_3(%arg0: i32) -> (i32, i32) {
    %c0_i32 = arith.constant 0 : i32
    %c0_i32_0 = arith.constant 0 : i32
    %c0_i32_1 = arith.constant 0 : i32
    return %c0_i32, %c0_i32_0 : i32, i32
  }
  func.func @transform_4(%arg0: i32) -> (i32, i32) {
    %c0_i32 = arith.constant 0 : i32
    %c0_i32_0 = arith.constant 0 : i32
    %c0_i32_1 = arith.constant 0 : i32
    return %c0_i32, %c0_i32_0 : i32, i32
  }
  func.func @transform_5(%arg0: i32) -> (i32, i32, i32) {
    %c0_i32 = arith.constant 0 : i32
    %c0_i32_0 = arith.constant 0 : i32
    %c0_i32_1 = arith.constant 0 : i32
    return %arg0, %c0_i32, %c0_i32_0 : i32, i32, i32
  }
}

</mosaic_0001>

<bundles_post_ra>
// kernel: tpu_custom_call.1
= control target key start
LH: loop header
LB: loop body
LE: loop exit
PB: predicated region body
PF: predicated region fallthrough
CT: control target
= control target key end

     0   :  { %s843_s18 = smov 0   ;;  %s845_s19 = smov 0   ;;  %s971_s0 = inlined_call_operand.vmem [shape: bf16[16,512], index: 0, kind: input, shape index: {}]   ;;  %s972_s1 = inlined_call_operand.vmem [shape: bf16[32,16], index: 1, kind: input, shape index: {}]   ;;  %s973_s2 = inlined_call_operand.vmem [shape: bf16[64,32], index: 2, kind: input, shape index: {}]   ;;  %s974_s3 = inlined_call_operand.vmem [shape: f32[32,1], index: 3, kind: input, shape index: {}]   ;;  %s975_s4 = inlined_call_operand.vmem [shape: f32[64,1], index: 4, kind: input, shape index: {}]   ;;  %s976_s5 = inlined_call_operand.vmem [shape: f32[2,64,1], index: 5, kind: output, shape index: {}]  }
   0x1   :  { %s847_s20 = smov 0  }
   0x2 LB: > { %s687_s21 = sadd.s32 4294967295, %s809_s20   ;;  %s860_s22 = sadd.s32 1, %s809_s20   ;;  %s809_s20 = sphi %s847_s20, %s979_s20   ;;  %s805_s19 = sphi %s845_s19, %s978_s19   ;;  %s801_s18 = sphi %s843_s18, %s977_s18  }
   0x3   : > { %s19_s23 = ssub.s32 %s809_s20, %s860_s22  ;;  %s22_s24 = sadd.s32 1, %s805_s19 }
   0x4   : > { %p20_p0 = scmp.eq.s32.totalorder %s19_s23, 0  ;;  %p29_p1 = scmp.ne.s32.totalorder %s805_s19, %s801_s18 }
   0x5   : > { %p30_p2 = scmp.eq.s32.totalorder %s809_s20, 0  ;;  %p690_p4 = scmp.ge.s32.totalorder %s809_s20, 2 }
   0x6   : > { %s869_s25 = scalar_select %p20_p0, %s805_s19, %s22_s24  }
   0x7   : > { %p31_p3 = por %p30_p2, %p29_p1  ;;  %177 = sbr.rel (%p690_p4) target bundleno = 18 (0x12), region = 32 }
   0xc   : > { %180 = sbr.rel (!%p31_p3) target bundleno = 18 (0x12), region = 36  ;;  %s182_s26 = sand.u32 (%p31_p3), 1, %s805_s19  }
   0xd   : > { %s744_s27 = sshll.u32 (%p31_p3), %s809_s20, 3  ;;  %s691_s28 = sshll.u32 (%p31_p3), %s182_s26, 4 }
   0xe   : > { %s187_s6 = scalar_lea.vmem (%p31_p3), %s971_s0, %s744_s27  ;;  %s184_s7 = scalar_lea.vmem (%p31_p3), [#allocation2], %s691_s28 }
   0xf   : > { %v218_v0 = vld [vmem:[%s187_s6] sm:$0xff] (%p31_p3)  ;;  %v220_v1 = vld [vmem:[%s187_s6 + $0x10] sm:$0xff] (%p31_p3) }
  0x10   : > { %219 = vst [vmem:[%s184_s7] sm:$0xff] (%p31_p3), %v218_v0 }
  0x11   : > { %221 = vst [vmem:[%s184_s7 + $0x8] sm:$0xff] %v220_v1 }
  0x12 PF: > { %p694_p5 = scmp.ge.s32.totalorder %s809_s20, 1  ;;  %p226_p6 = scmp.lt.s32.totalorder %s809_s20, 3 }
  0x14   : > { %p227_p7 = pnand %p694_p5, %p226_p6 }
  0x15   : > { %s233_s8 = sand.u32 (!%p227_p7), 1, %s801_s18   ;;  %p261_p8 = scmp.lt.s32.totalorder (!%p227_p7), %s687_s21, 1 }
  0x16   : > { %230 = sbr.rel (%p227_p7) target bundleno = 497 (0x1f1), region = 74  ;;  %s695_s13 = sshll.u32 (!%p227_p7), %s233_s8, 4 }
  0x17   : > { %s235_s14 = scalar_lea.vmem (!%p227_p7), [#allocation2], %s695_s13 }
  0x1b   : > { %v344_v2 = vld [vmem:[%s974_s3 + $0x10] sm:$0xff]  ;;  %v342_v3 = vld [vmem:[%s974_s3] sm:$0xff]  ;;  %v811_v4 = vmov 0   ;;  %v747_v8 = vld [vmem:[%s235_s14 + $0x4] sm:$0xf0]  ;;  %vm293_vm0 = vcmask 130048  }
  0x1c   : > { %784 = vset.pattern.permute.xlu0 %v811_v4  ;;  %v348_v5 = vpack.c.bf16 %v344_v2, %v344_v2  ;;  %785 = vset.pattern.permute.xlu1 %v811_v4  ;;  %v346_v6 = vpack.c.bf16 %v342_v3, %v342_v3  ;;  %v708_v7 = vld [vmem:[%s235_s14] sm:$0xf]  ;;  %v746_v9 = vld [vmem:[%s235_s14 + $0x4] sm:$0xf]  ;;  %v710_v11 = vld [vmem:[%s235_s14 + $0x8] sm:$0xf0] }
  0x1d   : > { %786 = vset.pattern.permute.xlu2 %v811_v4  ;;  %v709_v10 = vor.u32 %v747_v8, %v708_v7  ;;  %v345_v12 = vld [vmem:[%s974_s3 + $0x18] sm:$0xff]  ;;  %v343_v13 = vld [vmem:[%s974_s3 + $0x8] sm:$0xff]  ;;  %v713_v14 = vor.u32 %v746_v9, %v710_v11  ;;  %v748_v15 = vld [vmem:[%s972_s1] sm:$0xff]  ;;  %v812_v29 = vmov 839922192   ;;  %vm506_vm1 = vcmask 261120  }
  0x1e   : > { %370 = vperm.xlu0 %784, %v348_v5   ;;  %352 = vperm.xlu1 %785, %v346_v6   ;;  %v349_v16 = vpack.c.bf16 %v345_v12, %v345_v12  ;;  %v347_v17 = vpack.c.bf16 %v343_v13, %v343_v13  ;;  %v440_v18 = vld [vmem:[%s975_s4 + $0x10] sm:$0xff]  ;;  %v441_v19 = vld [vmem:[%s975_s4 + $0x18] sm:$0xff]  ;;  %v749_v20 = vld [vmem:[%s972_s1 + $0x8] sm:$0xff]  ;;  %v356_v30 = vunpack.c.l.s4 %v812_v29  ;;  %s981_s21 = smov (!%p261_p8, %s687_s21), 1  ;;  %vm617_vm2 = vcmask 7168  }
  0x1f   : > { %307 = vmatpush.bf16.msra.mxu0 %v709_v10  ;;  %326 = vmatpush.bf16.msra.mxu1 %v713_v14  ;;  %v443_v21 = vld [vmem:[%s975_s4 + $0x28] sm:$0xff]  ;;  %v444_v22 = vld [vmem:[%s975_s4 + $0x30] sm:$0xff]  ;;  %s745_s7 = sshll.u32 %s981_s21, 6 }
  0x20   : > { %v357_v33 = vunpack.c.0.s8 %v356_v30  ;;  %v751_v14 = vld [vmem:[%s973_s2 + $0x8] sm:$0xff]  ;;  %s265_s10 = scalar_lea.vmem %s976_s5, %s745_s7 }
  0x22   : > { %714 = vmatmul.msk.bf16.vlgmr.msra.gmra.mxu0 %vm293_vm0, %v748_v15  ;;  %716 = vmatmul.msk.bf16.vlgmr.msra.gmra.mxu1 %vm293_vm0, %v748_v15  ;;  %v750_v15 = vld [vmem:[%s973_s2] sm:$0xff] }
  0x26   : > { %379 = vperm.xlu0 %784, %v349_v16   ;;  %361 = vperm.xlu1 %785, %v347_v17   ;;  %v438_v16 = vld [vmem:[%s975_s4] sm:$0xff]  ;;  %v439_v17 = vld [vmem:[%s975_s4 + $0x8] sm:$0xff] }
  0x27   : > { %448 = vperm.xlu2 %786, %v438_v16  }
  0x2e   : > { %458 = vperm.xlu0 %784, %v440_v18   ;;  %463 = vperm.xlu1 %785, %v441_v19   ;;  %v752_v18 = vld [vmem:[%s973_s2 + $0x10] sm:$0xff]  ;;  %v442_v19 = vld [vmem:[%s975_s4 + $0x20] sm:$0xff] }
  0x2f   : > { %453 = vperm.xlu2 %786, %v439_v17  }
  0x32   : > { %715 = vmatmul.msk.bf16.gmra.mxu0 %vm293_vm0, %v749_v20  ;;  %717 = vmatmul.msk.bf16.gmra.mxu1 %vm293_vm0, %v749_v20  ;;  %v445_v20 = vld [vmem:[%s975_s4 + $0x38] sm:$0xff] }
  0x36   : > { %473 = vperm.xlu0 %784, %v443_v21   ;;  %478 = vperm.xlu1 %785, %v444_v22   ;;  %v753_v21 = vld [vmem:[%s973_s2 + $0x18] sm:$0xff] }
  0x37   : > { %468 = vperm.xlu2 %786, %v442_v19  }
  0x3f   : > { %483 = vperm.xlu2 %786, %v445_v20  }
  0x81   : > { %v449_v22 = vpop.permute.xlu2 %448 }
  0x90   : > { %v353_v27 = vpop.permute.xlu1 %352  ;;  %v371_v28 = vpop.permute.xlu0 %370 }
  0x91   : > { %v376_v34 = vperm.slane %v371_v28, %v357_v33  ;;  %v358_v40 = vperm.slane %v353_v27, %v357_v33 }
  0x93   : > { %v396_v43 = vunpack.c.l.bf16 %v376_v34  ;;  %v394_v51 = vunpack.c.l.bf16 %v358_v40  ;;  %v454_v34 = vpop.permute.xlu2 %453 }
  0x98   : > { %v362_v36 = vpop.permute.xlu1 %361  ;;  %v380_v37 = vpop.permute.xlu0 %379 }
  0x99   : > { %v367_v38 = vperm.slane %v362_v36, %v357_v33  ;;  %v385_v41 = vperm.slane %v380_v37, %v357_v33 }
  0x9b   : > { %v395_v48 = vunpack.c.l.bf16 %v367_v38  ;;  %v397_v52 = vunpack.c.l.bf16 %v385_v41 }
  0x9f   : > { %v309_v23 = vpop.f32.mrf.mxu0  ;;  %v328_v24 = vpop.f32.mrf.mxu1 }
  0xa0   : > { %v338_v42 = vpack.c.bf16 %v328_v24, %v309_v23  ;;  %v459_v29 = vpop.permute.xlu0 %458 }
  0xa2   : > { %v386_v53 = vunpack.c.l.bf16 %v338_v42  ;;  %v387_v59 = vunpack.c.h.bf16 %v338_v42 }
  0xa4   : > { %v398_v63 = vadd.f32 %v394_v51, %v386_v53  ;;  %v399_v5 = vadd.f32 %v394_v51, %v387_v59 }
  0xa6   : > { %v418_v10 = vmax.f32 %v398_v63, 0.0  ;;  %v419_v11 = vmax.f32 %v399_v5, 0.0 }
  0xa7   : > { %v311_v25 = vpop.f32.mrf.mxu0  ;;  %v330_v26 = vpop.f32.mrf.mxu1 }
  0xa8   : > { %v339_v39 = vpack.c.bf16 %v330_v26, %v311_v25 }
  0xaa   : > { %v388_v49 = vunpack.c.l.bf16 %v339_v39  ;;  %v389_v54 = vunpack.c.h.bf16 %v339_v39 }
  0xac   : > { %v400_v62 = vadd.f32 %v395_v48, %v388_v49  ;;  %v401_v0 = vadd.f32 %v395_v48, %v389_v54  ;;  %v469_v54 = vpop.permute.xlu2 %468 }
  0xae   : > { %v420_v8 = vmax.f32 %v400_v62, 0.0  ;;  %v421_v9 = vmax.f32 %v401_v0, 0.0  ;;  %v474_v62 = vpop.permute.xlu0 %473 }
  0xaf   : > { %v314_v31 = vpop.f32.mrf.mxu0  ;;  %v333_v32 = vpop.f32.mrf.mxu1 }
  0xb0   : > { %v340_v35 = vpack.c.bf16 %v333_v32, %v314_v31  ;;  %v426_v12 = vpack.c.bf16 %v420_v8, %v418_v10  ;;  %v427_v13 = vpack.c.bf16 %v421_v9, %v419_v11 }
  0xb2   : > { %v390_v44 = vunpack.c.l.bf16 %v340_v35  ;;  %v391_v45 = vunpack.c.h.bf16 %v340_v35 }
  0xb4   : > { %v402_v57 = vadd.f32 %v396_v43, %v390_v44  ;;  %v403_v58 = vadd.f32 %v396_v43, %v391_v45  ;;  %v464_v45 = vpop.permute.xlu1 %463 }
  0xb6   : > { %v422_v1 = vmax.f32 %v402_v57, 0.0  ;;  %v423_v3 = vmax.f32 %v403_v58, 0.0 }
  0xb7   : > { %v316_v46 = vpop.f32.mrf.mxu0  ;;  %v335_v47 = vpop.f32.mrf.mxu1 }
  0xb8   : > { %v341_v50 = vpack.c.bf16 %v335_v47, %v316_v46 }
  0xba   : > { %v392_v55 = vunpack.c.l.bf16 %v341_v50  ;;  %v393_v56 = vunpack.c.h.bf16 %v341_v50 }
  0xbc   : > { %v404_v60 = vadd.f32 %v397_v52, %v392_v55  ;;  %v405_v61 = vadd.f32 %v397_v52, %v393_v56 }
  0xbe   : > { %v424_v2 = vmax.f32 %v404_v60, 0.0  ;;  %v425_v4 = vmax.f32 %v405_v61, 0.0 }
  0xc0   : > { %v428_v6 = vpack.c.bf16 %v424_v2, %v422_v1  ;;  %v429_v7 = vpack.c.bf16 %v425_v4, %v423_v3 }
  0xc2   : > { %525 = vmatpush.bf16.msrb.mxu0 %v428_v6  ;;  %754 = vmatpush.bf16.msra.mxu2 %v428_v6  ;;  %v479_v6 = vpop.permute.xlu1 %478 }
  0xc3   : > { %554 = vmatpush.bf16.msrb.mxu1 %v429_v7  ;;  %756 = vmatpush.bf16.msra.mxu3 %v429_v7 }
  0xc6   : > { %526 = vmatpush.bf16.msrb.mxu0 %v426_v12  ;;  %755 = vmatpush.bf16.msra.mxu2 %v426_v12 }
  0xc7   : > { %555 = vmatpush.bf16.msrb.mxu1 %v427_v13  ;;  %757 = vmatpush.bf16.msra.mxu3 %v427_v13 }
  0xc9   : > { %735 = vmatmul.msk.bf16.vlgmr.msra.gmra.mxu2 %vm506_vm1, %v751_v14  ;;  %734 = vmatmul.msk.bf16.vlgmr.msrb.gmra.mxu0 %vm506_vm1, %v750_v15 }
  0xca   : > { %739 = vmatmul.msk.bf16.vlgmr.msra.gmra.mxu3 %vm506_vm1, %v751_v14  ;;  %738 = vmatmul.msk.bf16.vlgmr.msrb.gmra.mxu1 %vm506_vm1, %v750_v15  ;;  %v484_v14 = vpop.permute.xlu2 %483 }
  0xd9   : > { %736 = vmatmul.msk.bf16.gmra.mxu2 %vm506_vm1, %v752_v18 }
  0xda   : > { %740 = vmatmul.msk.bf16.gmra.mxu3 %vm506_vm1, %v752_v18 }
  0xe9   : > { %737 = vmatmul.msk.bf16.gmra.mxu2 %vm506_vm1, %v753_v21 }
  0xea   : > { %741 = vmatmul.msk.bf16.gmra.mxu3 %vm506_vm1, %v753_v21 }
 0x146   : > { %v528_v23 = vpop.f32.mrf.mxu0 }
 0x147   : > { %v529_v24 = vadd.f32 %v528_v23, %v449_v22  ;;  %v557_v25 = vpop.f32.mrf.mxu1 }
 0x148   : > { %v558_v26 = vadd.f32 %v557_v25, %v449_v22 }
 0x149   : > { %v577_v27 = vmax.f32 %v529_v24, 0.0 }
 0x14a   : > { %v578_v28 = vmax.f32 %v558_v26, 0.0 }
 0x14c   : > { %v533_v30 = vpop.f32.mrf.mxu2  ;;  %v593_v31 = vmax.f32 %v577_v27, %v578_v28 }
 0x14d   : > { %v534_v32 = vadd.f32 %v533_v30, %v459_v29  ;;  %v562_v33 = vpop.f32.mrf.mxu3 }
 0x14e   : > { %v563_v35 = vadd.f32 %v562_v33, %v459_v29  ;;  %594 = vmax.xlane.f32.xlu0 %v593_v31  ;;  %v530_v36 = vpop.f32.mrf.mxu0 }
 0x14f   : > { %v581_v37 = vmax.f32 %v534_v32, 0.0  ;;  %v531_v38 = vadd.f32 %v530_v36, %v454_v34  ;;  %v559_v39 = vpop.f32.mrf.mxu1 }
 0x150   : > { %v582_v40 = vmax.f32 %v563_v35, 0.0  ;;  %v560_v41 = vadd.f32 %v559_v39, %v454_v34 }
 0x151   : > { %v579_v42 = vmax.f32 %v531_v38, 0.0 }
 0x152   : > { %v599_v43 = vmax.f32 %v581_v37, %v582_v40  ;;  %v580_v44 = vmax.f32 %v560_v41, 0.0 }
 0x154   : > { %600 = vmax.xlane.f32.xlu2 %v599_v43  ;;  %v535_v46 = vpop.f32.mrf.mxu2  ;;  %v596_v47 = vmax.f32 %v579_v42, %v580_v44 }
 0x155   : > { %v536_v48 = vadd.f32 %v535_v46, %v464_v45  ;;  %v564_v49 = vpop.f32.mrf.mxu3 }
 0x156   : > { %v565_v50 = vadd.f32 %v564_v49, %v464_v45  ;;  %597 = vmax.xlane.f32.xlu1 %v596_v47 }
 0x157   : > { %v583_v51 = vmax.f32 %v536_v48, 0.0 }
 0x158   : > { %v584_v52 = vmax.f32 %v565_v50, 0.0 }
 0x15a   : > { %v602_v53 = vmax.f32 %v583_v51, %v584_v52 }
 0x15c   : > { %603 = vmax.xlane.f32.xlu2 %v602_v53  ;;  %v538_v55 = vpop.f32.mrf.mxu2 }
 0x15d   : > { %v539_v56 = vadd.f32 %v538_v55, %v469_v54  ;;  %v567_v57 = vpop.f32.mrf.mxu3 }
 0x15e   : > { %v568_v58 = vadd.f32 %v567_v57, %v469_v54 }
 0x15f   : > { %v585_v59 = vmax.f32 %v539_v56, 0.0 }
 0x160   : > { %v586_v60 = vmax.f32 %v568_v58, 0.0 }
 0x162   : > { %v605_v61 = vmax.f32 %v585_v59, %v586_v60 }
 0x164   : > { %606 = vmax.xlane.f32.xlu0 %v605_v61  ;;  %v540_v63 = vpop.f32.mrf.mxu2 }
 0x165   : > { %v541_v0 = vadd.f32 %v540_v63, %v474_v62  ;;  %v569_v1 = vpop.f32.mrf.mxu3 }
 0x166   : > { %v570_v2 = vadd.f32 %v569_v1, %v474_v62 }
 0x167   : > { %v587_v3 = vmax.f32 %v541_v0, 0.0 }
 0x168   : > { %v588_v4 = vmax.f32 %v570_v2, 0.0 }
 0x16a   : > { %v608_v5 = vmax.f32 %v587_v3, %v588_v4 }
 0x16c   : > { %609 = vmax.xlane.f32.xlu1 %v608_v5  ;;  %v543_v7 = vpop.f32.mrf.mxu2 }
 0x16d   : > { %v544_v8 = vadd.f32 %v543_v7, %v479_v6  ;;  %v572_v9 = vpop.f32.mrf.mxu3 }
 0x16e   : > { %v573_v10 = vadd.f32 %v572_v9, %v479_v6 }
 0x16f   : > { %v589_v11 = vmax.f32 %v544_v8, 0.0 }
 0x170   : > { %v590_v12 = vmax.f32 %v573_v10, 0.0 }
 0x172   : > { %v611_v13 = vmax.f32 %v589_v11, %v590_v12 }
 0x174   : > { %612 = vmax.xlane.f32.xlu2 %v611_v13  ;;  %v545_v15 = vpop.f32.mrf.mxu2 }
 0x175   : > { %v546_v16 = vadd.f32 %v545_v15, %v484_v14  ;;  %v574_v17 = vpop.f32.mrf.mxu3 }
 0x176   : > { %v575_v18 = vadd.f32 %v574_v17, %v484_v14 }
 0x177   : > { %v591_v19 = vmax.f32 %v546_v16, 0.0 }
 0x178   : > { %v592_v20 = vmax.f32 %v575_v18, 0.0 }
 0x17a   : > { %v614_v21 = vmax.f32 %v591_v19, %v592_v20 }
 0x17c   : > { %615 = vmax.xlane.f32.xlu0 %v614_v21 }
 0x1c1   : > { %v595_v22 = vpop.xlane.xlu0 %594 }
 0x1c2   : > { %618 = vst.msk [vmem:[%s265_s10] sm:$0xff] %vm617_vm2, %v595_v22 }
 0x1c7   : > { %v601_v23 = vpop.xlane.xlu2 %600 }
 0x1c8   : > { %620 = vst.msk [vmem:[%s265_s10 + $0x10] sm:$0xff] %vm617_vm2, %v601_v23 }
 0x1c9   : > { %v598_v24 = vpop.xlane.xlu1 %597 }
 0x1ca   : > { %619 = vst.msk [vmem:[%s265_s10 + $0x8] sm:$0xff] %vm617_vm2, %v598_v24 }
 0x1cf   : > { %v604_v25 = vpop.xlane.xlu2 %603 }
 0x1d0   : > { %621 = vst.msk [vmem:[%s265_s10 + $0x18] sm:$0xff] %vm617_vm2, %v604_v25 }
 0x1d7   : > { %v607_v26 = vpop.xlane.xlu0 %606 }
 0x1d8   : > { %622 = vst.msk [vmem:[%s265_s10 + $0x20] sm:$0xff] %vm617_vm2, %v607_v26 }
 0x1df   : > { %v610_v27 = vpop.xlane.xlu1 %609 }
 0x1e0   : > { %623 = vst.msk [vmem:[%s265_s10 + $0x28] sm:$0xff] %vm617_vm2, %v610_v27 }
 0x1e7   : > { %v613_v28 = vpop.xlane.xlu2 %612 }
 0x1e8   : > { %624 = vst.msk [vmem:[%s265_s10 + $0x30] sm:$0xff] %vm617_vm2, %v613_v28 }
 0x1ef   : > { %v616_v29 = vpop.xlane.xlu0 %615 }
 0x1f0   : > { %625 = vst.msk [vmem:[%s265_s10 + $0x38] sm:$0xff] %vm617_vm2, %v616_v29 }
 0x1f1 PF: > { %p12_p9 = scmp.ge.s32.totalorder %s860_s22, 4   ;;  %s977_s18 = smov %s805_s19 }
 0x1f2   : > { %s978_s19 = smov %s869_s25  ;;  %s979_s20 = smov %s860_s22 }
 0x1f3   :  { %14 = sbr.rel (!%p12_p9) target bundleno = 2 (0x2), region = 113 }

// kernel: tpu_custom_call.1
= control target key start
LH: loop header
LB: loop body
LE: loop exit
PB: predicated region body
PF: predicated region fallthrough
CT: control target
= control target key end

     0   :  { %s843_s18 = smov 0   ;;  %s845_s19 = smov 0   ;;  %s971_s0 = inlined_call_operand.vmem [shape: bf16[16,512], index: 0, kind: input, shape index: {}]   ;;  %s972_s1 = inlined_call_operand.vmem [shape: bf16[32,16], index: 1, kind: input, shape index: {}]   ;;  %s973_s2 = inlined_call_operand.vmem [shape: bf16[64,32], index: 2, kind: input, shape index: {}]   ;;  %s974_s3 = inlined_call_operand.vmem [shape: f32[32,1], index: 3, kind: input, shape index: {}]   ;;  %s975_s4 = inlined_call_operand.vmem [shape: f32[64,1], index: 4, kind: input, shape index: {}]   ;;  %s976_s5 = inlined_call_operand.vmem [shape: f32[2,64,1], index: 5, kind: output, shape index: {}]  }
   0x1   :  { %s847_s20 = smov 0  }
   0x2 LB: > { %s687_s21 = sadd.s32 4294967295, %s809_s20   ;;  %s860_s22 = sadd.s32 1, %s809_s20   ;;  %s809_s20 = sphi %s847_s20, %s979_s20   ;;  %s805_s19 = sphi %s845_s19, %s978_s19   ;;  %s801_s18 = sphi %s843_s18, %s977_s18  }
   0x3   : > { %s19_s23 = ssub.s32 %s809_s20, %s860_s22  ;;  %s22_s24 = sadd.s32 1, %s805_s19 }
   0x4   : > { %p20_p0 = scmp.eq.s32.totalorder %s19_s23, 0  ;;  %p29_p1 = scmp.ne.s32.totalorder %s805_s19, %s801_s18 }
   0x5   : > { %p30_p2 = scmp.eq.s32.totalorder %s809_s20, 0  ;;  %p690_p4 = scmp.ge.s32.totalorder %s809_s20, 2 }
   0x6   : > { %s869_s25 = scalar_select %p20_p0, %s805_s19, %s22_s24  }
   0x7   : > { %p31_p3 = por %p30_p2, %p29_p1  ;;  %177 = sbr.rel (%p690_p4) target bundleno = 18 (0x12), region = 32 }
   0xc   : > { %180 = sbr.rel (!%p31_p3) target bundleno = 18 (0x12), region = 36  ;;  %s182_s26 = sand.u32 (%p31_p3), 1, %s805_s19  }
   0xd   : > { %s744_s27 = sshll.u32 (%p31_p3), %s809_s20, 3  ;;  %s691_s28 = sshll.u32 (%p31_p3), %s182_s26, 4 }
   0xe   : > { %s187_s6 = scalar_lea.vmem (%p31_p3), %s971_s0, %s744_s27  ;;  %s184_s7 = scalar_lea.vmem (%p31_p3), [#allocation2], %s691_s28 }
   0xf   : > { %v218_v0 = vld [vmem:[%s187_s6] sm:$0xff] (%p31_p3)  ;;  %v220_v1 = vld [vmem:[%s187_s6 + $0x10] sm:$0xff] (%p31_p3) }
  0x10   : > { %219 = vst [vmem:[%s184_s7] sm:$0xff] (%p31_p3), %v218_v0 }
  0x11   : > { %221 = vst [vmem:[%s184_s7 + $0x8] sm:$0xff] %v220_v1 }
  0x12 PF: > { %p694_p5 = scmp.ge.s32.totalorder %s809_s20, 1  ;;  %p226_p6 = scmp.lt.s32.totalorder %s809_s20, 3 }
  0x14   : > { %p227_p7 = pnand %p694_p5, %p226_p6 }
  0x15   : > { %s233_s8 = sand.u32 (!%p227_p7), 1, %s801_s18   ;;  %p261_p8 = scmp.lt.s32.totalorder (!%p227_p7), %s687_s21, 1 }
  0x16   : > { %230 = sbr.rel (%p227_p7) target bundleno = 497 (0x1f1), region = 74  ;;  %s695_s13 = sshll.u32 (!%p227_p7), %s233_s8, 4 }
  0x17   : > { %s235_s14 = scalar_lea.vmem (!%p227_p7), [#allocation2], %s695_s13 }
  0x1b   : > { %v344_v2 = vld [vmem:[%s974_s3 + $0x10] sm:$0xff]  ;;  %v342_v3 = vld [vmem:[%s974_s3] sm:$0xff]  ;;  %v811_v4 = vmov 0   ;;  %v747_v8 = vld [vmem:[%s235_s14 + $0x4] sm:$0xf0]  ;;  %vm293_vm0 = vcmask 130048  }
  0x1c   : > { %784 = vset.pattern.permute.xlu0 %v811_v4  ;;  %v348_v5 = vpack.c.bf16 %v344_v2, %v344_v2  ;;  %785 = vset.pattern.permute.xlu1 %v811_v4  ;;  %v346_v6 = vpack.c.bf16 %v342_v3, %v342_v3  ;;  %v708_v7 = vld [vmem:[%s235_s14] sm:$0xf]  ;;  %v746_v9 = vld [vmem:[%s235_s14 + $0x4] sm:$0xf]  ;;  %v710_v11 = vld [vmem:[%s235_s14 + $0x8] sm:$0xf0] }
  0x1d   : > { %786 = vset.pattern.permute.xlu2 %v811_v4  ;;  %v709_v10 = vor.u32 %v747_v8, %v708_v7  ;;  %v345_v12 = vld [vmem:[%s974_s3 + $0x18] sm:$0xff]  ;;  %v343_v13 = vld [vmem:[%s974_s3 + $0x8] sm:$0xff]  ;;  %v713_v14 = vor.u32 %v746_v9, %v710_v11  ;;  %v748_v15 = vld [vmem:[%s972_s1] sm:$0xff]  ;;  %v812_v29 = vmov 839922192   ;;  %vm506_vm1 = vcmask 261120  }
  0x1e   : > { %370 = vperm.xlu0 %784, %v348_v5   ;;  %352 = vperm.xlu1 %785, %v346_v6   ;;  %v349_v16 = vpack.c.bf16 %v345_v12, %v345_v12  ;;  %v347_v17 = vpack.c.bf16 %v343_v13, %v343_v13  ;;  %v440_v18 = vld [vmem:[%s975_s4 + $0x10] sm:$0xff]  ;;  %v441_v19 = vld [vmem:[%s975_s4 + $0x18] sm:$0xff]  ;;  %v749_v20 = vld [vmem:[%s972_s1 + $0x8] sm:$0xff]  ;;  %v356_v30 = vunpack.c.l.s4 %v812_v29  ;;  %s981_s21 = smov (!%p261_p8, %s687_s21), 1  ;;  %vm617_vm2 = vcmask 7168  }
  0x1f   : > { %307 = vmatpush.bf16.msra.mxu0 %v709_v10  ;;  %326 = vmatpush.bf16.msra.mxu1 %v713_v14  ;;  %v443_v21 = vld [vmem:[%s975_s4 + $0x28] sm:$0xff]  ;;  %v444_v22 = vld [vmem:[%s975_s4 + $0x30] sm:$0xff]  ;;  %s745_s7 = sshll.u32 %s981_s21, 6 }
  0x20   : > { %v357_v33 = vunpack.c.0.s8 %v356_v30  ;;  %v751_v14 = vld [vmem:[%s973_s2 + $0x8] sm:$0xff]  ;;  %s265_s10 = scalar_lea.vmem %s976_s5, %s745_s7 }
  0x22   : > { %714 = vmatmul.msk.bf16.vlgmr.msra.gmra.mxu0 %vm293_vm0, %v748_v15  ;;  %716 = vmatmul.msk.bf16.vlgmr.msra.gmra.mxu1 %vm293_vm0, %v748_v15  ;;  %v750_v15 = vld [vmem:[%s973_s2] sm:$0xff] }
  0x26   : > { %379 = vperm.xlu0 %784, %v349_v16   ;;  %361 = vperm.xlu1 %785, %v347_v17   ;;  %v438_v16 = vld [vmem:[%s975_s4] sm:$0xff]  ;;  %v439_v17 = vld [vmem:[%s975_s4 + $0x8] sm:$0xff] }
  0x27   : > { %448 = vperm.xlu2 %786, %v438_v16  }
  0x2e   : > { %458 = vperm.xlu0 %784, %v440_v18   ;;  %463 = vperm.xlu1 %785, %v441_v19   ;;  %v752_v18 = vld [vmem:[%s973_s2 + $0x10] sm:$0xff]  ;;  %v442_v19 = vld [vmem:[%s975_s4 + $0x20] sm:$0xff] }
  0x2f   : > { %453 = vperm.xlu2 %786, %v439_v17  }
  0x32   : > { %715 = vmatmul.msk.bf16.gmra.mxu0 %vm293_vm0, %v749_v20  ;;  %717 = vmatmul.msk.bf16.gmra.mxu1 %vm293_vm0, %v749_v20  ;;  %v445_v20 = vld [vmem:[%s975_s4 + $0x38] sm:$0xff] }
  0x36   : > { %473 = vperm.xlu0 %784, %v443_v21   ;;  %478 = vperm.xlu1 %785, %v444_v22   ;;  %v753_v21 = vld [vmem:[%s973_s2 + $0x18] sm:$0xff] }
  0x37   : > { %468 = vperm.xlu2 %786, %v442_v19  }
  0x3f   : > { %483 = vperm.xlu2 %786, %v445_v20  }
  0x81   : > { %v449_v22 = vpop.permute.xlu2 %448 }
  0x90   : > { %v353_v27 = vpop.permute.xlu1 %352  ;;  %v371_v28 = vpop.permute.xlu0 %370 }
  0x91   : > { %v376_v34 = vperm.slane %v371_v28, %v357_v33  ;;  %v358_v40 = vperm.slane %v353_v27, %v357_v33 }
  0x93   : > { %v396_v43 = vunpack.c.l.bf16 %v376_v34  ;;  %v394_v51 = vunpack.c.l.bf16 %v358_v40  ;;  %v454_v34 = vpop.permute.xlu2 %453 }
  0x98   : > { %v362_v36 = vpop.permute.xlu1 %361  ;;  %v380_v37 = vpop.permute.xlu0 %379 }
  0x99   : > { %v367_v38 = vperm.slane %v362_v36, %v357_v33  ;;  %v385_v41 = vperm.slane %v380_v37, %v357_v33 }
  0x9b   : > { %v395_v48 = vunpack.c.l.bf16 %v367_v38  ;;  %v397_v52 = vunpack.c.l.bf16 %v385_v41 }
  0x9f   : > { %v309_v23 = vpop.f32.mrf.mxu0  ;;  %v328_v24 = vpop.f32.mrf.mxu1 }
  0xa0   : > { %v338_v42 = vpack.c.bf16 %v328_v24, %v309_v23  ;;  %v459_v29 = vpop.permute.xlu0 %458 }
  0xa2   : > { %v386_v53 = vunpack.c.l.bf16 %v338_v42  ;;  %v387_v59 = vunpack.c.h.bf16 %v338_v42 }
  0xa4   : > { %v398_v63 = vadd.f32 %v394_v51, %v386_v53  ;;  %v399_v5 = vadd.f32 %v394_v51, %v387_v59 }
  0xa6   : > { %v418_v10 = vmax.f32 %v398_v63, 0.0  ;;  %v419_v11 = vmax.f32 %v399_v5, 0.0 }
  0xa7   : > { %v311_v25 = vpop.f32.mrf.mxu0  ;;  %v330_v26 = vpop.f32.mrf.mxu1 }
  0xa8   : > { %v339_v39 = vpack.c.bf16 %v330_v26, %v311_v25 }
  0xaa   : > { %v388_v49 = vunpack.c.l.bf16 %v339_v39  ;;  %v389_v54 = vunpack.c.h.bf16 %v339_v39 }
  0xac   : > { %v400_v62 = vadd.f32 %v395_v48, %v388_v49  ;;  %v401_v0 = vadd.f32 %v395_v48, %v389_v54  ;;  %v469_v54 = vpop.permute.xlu2 %468 }
  0xae   : > { %v420_v8 = vmax.f32 %v400_v62, 0.0  ;;  %v421_v9 = vmax.f32 %v401_v0, 0.0  ;;  %v474_v62 = vpop.permute.xlu0 %473 }
  0xaf   : > { %v314_v31 = vpop.f32.mrf.mxu0  ;;  %v333_v32 = vpop.f32.mrf.mxu1 }
  0xb0   : > { %v340_v35 = vpack.c.bf16 %v333_v32, %v314_v31  ;;  %v426_v12 = vpack.c.bf16 %v420_v8, %v418_v10  ;;  %v427_v13 = vpack.c.bf16 %v421_v9, %v419_v11 }
  0xb2   : > { %v390_v44 = vunpack.c.l.bf16 %v340_v35  ;;  %v391_v45 = vunpack.c.h.bf16 %v340_v35 }
  0xb4   : > { %v402_v57 = vadd.f32 %v396_v43, %v390_v44  ;;  %v403_v58 = vadd.f32 %v396_v43, %v391_v45  ;;  %v464_v45 = vpop.permute.xlu1 %463 }
  0xb6   : > { %v422_v1 = vmax.f32 %v402_v57, 0.0  ;;  %v423_v3 = vmax.f32 %v403_v58, 0.0 }
  0xb7   : > { %v316_v46 = vpop.f32.mrf.mxu0  ;;  %v335_v47 = vpop.f32.mrf.mxu1 }
  0xb8   : > { %v341_v50 = vpack.c.bf16 %v335_v47, %v316_v46 }
  0xba   : > { %v392_v55 = vunpack.c.l.bf16 %v341_v50  ;;  %v393_v56 = vunpack.c.h.bf16 %v341_v50 }
  0xbc   : > { %v404_v60 = vadd.f32 %v397_v52, %v392_v55  ;;  %v405_v61 = vadd.f32 %v397_v52, %v393_v56 }
  0xbe   : > { %v424_v2 = vmax.f32 %v404_v60, 0.0  ;;  %v425_v4 = vmax.f32 %v405_v61, 0.0 }
  0xc0   : > { %v428_v6 = vpack.c.bf16 %v424_v2, %v422_v1  ;;  %v429_v7 = vpack.c.bf16 %v425_v4, %v423_v3 }
  0xc2   : > { %525 = vmatpush.bf16.msrb.mxu0 %v428_v6  ;;  %754 = vmatpush.bf16.msra.mxu2 %v428_v6  ;;  %v479_v6 = vpop.permute.xlu1 %478 }
  0xc3   : > { %554 = vmatpush.bf16.msrb.mxu1 %v429_v7  ;;  %756 = vmatpush.bf16.msra.mxu3 %v429_v7 }
  0xc6   : > { %526 = vmatpush.bf16.msrb.mxu0 %v426_v12  ;;  %755 = vmatpush.bf16.msra.mxu2 %v426_v12 }
  0xc7   : > { %555 = vmatpush.bf16.msrb.mxu1 %v427_v13  ;;  %757 = vmatpush.bf16.msra.mxu3 %v427_v13 }
  0xc9   : > { %735 = vmatmul.msk.bf16.vlgmr.msra.gmra.mxu2 %vm506_vm1, %v751_v14  ;;  %734 = vmatmul.msk.bf16.vlgmr.msrb.gmra.mxu0 %vm506_vm1, %v750_v15 }
  0xca   : > { %739 = vmatmul.msk.bf16.vlgmr.msra.gmra.mxu3 %vm506_vm1, %v751_v14  ;;  %738 = vmatmul.msk.bf16.vlgmr.msrb.gmra.mxu1 %vm506_vm1, %v750_v15  ;;  %v484_v14 = vpop.permute.xlu2 %483 }
  0xd9   : > { %736 = vmatmul.msk.bf16.gmra.mxu2 %vm506_vm1, %v752_v18 }
  0xda   : > { %740 = vmatmul.msk.bf16.gmra.mxu3 %vm506_vm1, %v752_v18 }
  0xe9   : > { %737 = vmatmul.msk.bf16.gmra.mxu2 %vm506_vm1, %v753_v21 }
  0xea   : > { %741 = vmatmul.msk.bf16.gmra.mxu3 %vm506_vm1, %v753_v21 }
 0x146   : > { %v528_v23 = vpop.f32.mrf.mxu0 }
 0x147   : > { %v529_v24 = vadd.f32 %v528_v23, %v449_v22  ;;  %v557_v25 = vpop.f32.mrf.mxu1 }
 0x148   : > { %v558_v26 = vadd.f32 %v557_v25, %v449_v22 }
 0x149   : > { %v577_v27 = vmax.f32 %v529_v24, 0.0 }
 0x14a   : > { %v578_v28 = vmax.f32 %v558_v26, 0.0 }
 0x14c   : > { %v533_v30 = vpop.f32.mrf.mxu2  ;;  %v593_v31 = vmax.f32 %v577_v27, %v578_v28 }
 0x14d   : > { %v534_v32 = vadd.f32 %v533_v30, %v459_v29  ;;  %v562_v33 = vpop.f32.mrf.mxu3 }
 0x14e   : > { %v563_v35 = vadd.f32 %v562_v33, %v459_v29  ;;  %594 = vmax.xlane.f32.xlu0 %v593_v31  ;;  %v530_v36 = vpop.f32.mrf.mxu0 }
 0x14f   : > { %v581_v37 = vmax.f32 %v534_v32, 0.0  ;;  %v531_v38 = vadd.f32 %v530_v36, %v454_v34  ;;  %v559_v39 = vpop.f32.mrf.mxu1 }
 0x150   : > { %v582_v40 = vmax.f32 %v563_v35, 0.0  ;;  %v560_v41 = vadd.f32 %v559_v39, %v454_v34 }
 0x151   : > { %v579_v42 = vmax.f32 %v531_v38, 0.0 }
 0x152   : > { %v599_v43 = vmax.f32 %v581_v37, %v582_v40  ;;  %v580_v44 = vmax.f32 %v560_v41, 0.0 }
 0x154   : > { %600 = vmax.xlane.f32.xlu2 %v599_v43  ;;  %v535_v46 = vpop.f32.mrf.mxu2  ;;  %v596_v47 = vmax.f32 %v579_v42, %v580_v44 }
 0x155   : > { %v536_v48 = vadd.f32 %v535_v46, %v464_v45  ;;  %v564_v49 = vpop.f32.mrf.mxu3 }
 0x156   : > { %v565_v50 = vadd.f32 %v564_v49, %v464_v45  ;;  %597 = vmax.xlane.f32.xlu1 %v596_v47 }
 0x157   : > { %v583_v51 = vmax.f32 %v536_v48, 0.0 }
 0x158   : > { %v584_v52 = vmax.f32 %v565_v50, 0.0 }
 0x15a   : > { %v602_v53 = vmax.f32 %v583_v51, %v584_v52 }
 0x15c   : > { %603 = vmax.xlane.f32.xlu2 %v602_v53  ;;  %v538_v55 = vpop.f32.mrf.mxu2 }
 0x15d   : > { %v539_v56 = vadd.f32 %v538_v55, %v469_v54  ;;  %v567_v57 = vpop.f32.mrf.mxu3 }
 0x15e   : > { %v568_v58 = vadd.f32 %v567_v57, %v469_v54 }
 0x15f   : > { %v585_v59 = vmax.f32 %v539_v56, 0.0 }
 0x160   : > { %v586_v60 = vmax.f32 %v568_v58, 0.0 }
 0x162   : > { %v605_v61 = vmax.f32 %v585_v59, %v586_v60 }
 0x164   : > { %606 = vmax.xlane.f32.xlu0 %v605_v61  ;;  %v540_v63 = vpop.f32.mrf.mxu2 }
 0x165   : > { %v541_v0 = vadd.f32 %v540_v63, %v474_v62  ;;  %v569_v1 = vpop.f32.mrf.mxu3 }
 0x166   : > { %v570_v2 = vadd.f32 %v569_v1, %v474_v62 }
 0x167   : > { %v587_v3 = vmax.f32 %v541_v0, 0.0 }
 0x168   : > { %v588_v4 = vmax.f32 %v570_v2, 0.0 }
 0x16a   : > { %v608_v5 = vmax.f32 %v587_v3, %v588_v4 }
 0x16c   : > { %609 = vmax.xlane.f32.xlu1 %v608_v5  ;;  %v543_v7 = vpop.f32.mrf.mxu2 }
 0x16d   : > { %v544_v8 = vadd.f32 %v543_v7, %v479_v6  ;;  %v572_v9 = vpop.f32.mrf.mxu3 }
 0x16e   : > { %v573_v10 = vadd.f32 %v572_v9, %v479_v6 }
 0x16f   : > { %v589_v11 = vmax.f32 %v544_v8, 0.0 }
 0x170   : > { %v590_v12 = vmax.f32 %v573_v10, 0.0 }
 0x172   : > { %v611_v13 = vmax.f32 %v589_v11, %v590_v12 }
 0x174   : > { %612 = vmax.xlane.f32.xlu2 %v611_v13  ;;  %v545_v15 = vpop.f32.mrf.mxu2 }
 0x175   : > { %v546_v16 = vadd.f32 %v545_v15, %v484_v14  ;;  %v574_v17 = vpop.f32.mrf.mxu3 }
 0x176   : > { %v575_v18 = vadd.f32 %v574_v17, %v484_v14 }
 0x177   : > { %v591_v19 = vmax.f32 %v546_v16, 0.0 }
 0x178   : > { %v592_v20 = vmax.f32 %v575_v18, 0.0 }
 0x17a   : > { %v614_v21 = vmax.f32 %v591_v19, %v592_v20 }
 0x17c   : > { %615 = vmax.xlane.f32.xlu0 %v614_v21 }
 0x1c1   : > { %v595_v22 = vpop.xlane.xlu0 %594 }
 0x1c2   : > { %618 = vst.msk [vmem:[%s265_s10] sm:$0xff] %vm617_vm2, %v595_v22 }
 0x1c7   : > { %v601_v23 = vpop.xlane.xlu2 %600 }
 0x1c8   : > { %620 = vst.msk [vmem:[%s265_s10 + $0x10] sm:$0xff] %vm617_vm2, %v601_v23 }
 0x1c9   : > { %v598_v24 = vpop.xlane.xlu1 %597 }
 0x1ca   : > { %619 = vst.msk [vmem:[%s265_s10 + $0x8] sm:$0xff] %vm617_vm2, %v598_v24 }
 0x1cf   : > { %v604_v25 = vpop.xlane.xlu2 %603 }
 0x1d0   : > { %621 = vst.msk [vmem:[%s265_s10 + $0x18] sm:$0xff] %vm617_vm2, %v604_v25 }
 0x1d7   : > { %v607_v26 = vpop.xlane.xlu0 %606 }
 0x1d8   : > { %622 = vst.msk [vmem:[%s265_s10 + $0x20] sm:$0xff] %vm617_vm2, %v607_v26 }
 0x1df   : > { %v610_v27 = vpop.xlane.xlu1 %609 }
 0x1e0   : > { %623 = vst.msk [vmem:[%s265_s10 + $0x28] sm:$0xff] %vm617_vm2, %v610_v27 }
 0x1e7   : > { %v613_v28 = vpop.xlane.xlu2 %612 }
 0x1e8   : > { %624 = vst.msk [vmem:[%s265_s10 + $0x30] sm:$0xff] %vm617_vm2, %v613_v28 }
 0x1ef   : > { %v616_v29 = vpop.xlane.xlu0 %615 }
 0x1f0   : > { %625 = vst.msk [vmem:[%s265_s10 + $0x38] sm:$0xff] %vm617_vm2, %v616_v29 }
 0x1f1 PF: > { %p12_p9 = scmp.ge.s32.totalorder %s860_s22, 4   ;;  %s977_s18 = smov %s805_s19 }
 0x1f2   : > { %s978_s19 = smov %s869_s25  ;;  %s979_s20 = smov %s860_s22 }
 0x1f3   :  { %14 = sbr.rel (!%p12_p9) target bundleno = 2 (0x2), region = 113 }

</bundles_post_ra>
